<compile_context>
chip_gen: v7x
topology: tpu7x:2x2x1
jax: 0.10.0
libtpu: 0.0.40
codegen_flags: <defaults>
</compile_context>

<pallas_src>
import functools

import jax
import jax.numpy as jnp
import numpy as np
from jax.experimental import pallas as pl
from jax.experimental.pallas import tpu as pltpu

D_MODEL = 32
NHEAD = 4
DIM_FF = 64
EPS = 1e-5
NEG_INF = -1e30


def _encoder_layer_kernel(
    x_ref, pos_ref,
    wqk_ref, bqk_ref, wv_ref, bv_ref,
    wo_ref, bo_ref,
    ln1_g_ref, ln1_b_ref, ln2_g_ref, ln2_b_ref,
    w1_ref, b1_ref, w2_ref, b2_ref,
    y_ref, attn_ref,
    *, nhead, n_batch,
):
    R, E = x_ref.shape            # R = L * N flattened tokens, rows in (l, b) order
    hd = E // nhead

    x = x_ref[...]                                   # (R, E) f32 residual stream
    qk_in = (x + pos_ref[...]).astype(jnp.bfloat16)  # q = k = src + pos
    x_b = x.astype(jnp.bfloat16)

    # Fused Q/K projection (q part pre-scaled by 1/sqrt(hd) in the wrapper) and V.
    qk = jnp.dot(qk_in, wqk_ref[...], preferred_element_type=jnp.float32) + bqk_ref[...]
    v = jnp.dot(x_b, wv_ref[...], preferred_element_type=jnp.float32) + bv_ref[...]

    qk_b = qk.astype(jnp.bfloat16)                   # (R, 2E)
    v_b = v.astype(jnp.bfloat16)                     # (R, E)

    # Additive same-batch mask, built in-kernel (batch id of flattened row r is r % N).
    # Hoisted out of the head loop: computed once, reused by all heads.
    row_bid = jax.lax.broadcasted_iota(jnp.int32, (R, R), 0) % n_batch
    col_bid = jax.lax.broadcasted_iota(jnp.int32, (R, R), 1) % n_batch
    mask = jnp.where(row_bid == col_bid, 0.0, NEG_INF).astype(jnp.float32)   # (R, R)

    attn_out = jnp.zeros((R, E), jnp.float32)        # out-projected attention (pre-bias)
    attn0 = jnp.zeros((n_batch, R), jnp.float32)     # query-row-0 weights, summed over heads

    for h in range(nhead):                           # static, fully unrolled (nhead = 4)
        qh = qk_b[:, h * hd:(h + 1) * hd]            # (R, hd), already scaled
        kh = qk_b[:, E + h * hd:E + (h + 1) * hd]    # (R, hd)
        vh = v_b[:, h * hd:(h + 1) * hd]             # (R, hd)

        # scores over all flattened rows; cross-batch pairs get -1e30 -> softmax 0.
        s = jax.lax.dot_general(
            qh, kh, (((1,), (1,)), ((), ())),
            preferred_element_type=jnp.float32)      # (R, R)
        s = s + mask
        s = s - jnp.max(s, axis=-1, keepdims=True)
        e = jnp.exp(s)
        p = e * pl.reciprocal(jnp.sum(e, axis=-1, keepdims=True), approx=True)

        # rows 0..N-1 are (query l = 0, batch b) -> exactly the slice forward_post uses.
        attn0 = attn0 + p[:n_batch, :]

        ctx = jnp.dot(p.astype(jnp.bfloat16), vh,
                      preferred_element_type=jnp.float32)          # (R, hd)
        wo_h = wo_ref[h * hd:(h + 1) * hd, :]                      # (hd, E) sublane slice
        attn_out = attn_out + jnp.dot(ctx.astype(jnp.bfloat16), wo_h,
                                      preferred_element_type=jnp.float32)

    # nn.MultiheadAttention default: attention weights averaged over heads.
    attn_ref[...] = attn0 * (1.0 / nhead)

    attn_out = attn_out + bo_ref[...]

    # residual + LayerNorm1   (dropout1 == identity)
    s1 = x + attn_out
    mu = jnp.mean(s1, axis=-1, keepdims=True)
    var = jnp.mean((s1 - mu) ** 2, axis=-1, keepdims=True)
    s1 = (s1 - mu) * jax.lax.rsqrt(var + EPS) * ln1_g_ref[...] + ln1_b_ref[...]

    # FFN: linear1 -> relu -> linear2   (dropout == identity)
    h1 = jnp.dot(s1.astype(jnp.bfloat16), w1_ref[...],
                 preferred_element_type=jnp.float32) + b1_ref[...]
    h1 = jnp.maximum(h1, 0.0)
    f2 = jnp.dot(h1.astype(jnp.bfloat16), w2_ref[...],
                 preferred_element_type=jnp.float32) + b2_ref[...]

    # residual + LayerNorm2   (dropout2 == identity)
    t = s1 + f2
    mu2 = jnp.mean(t, axis=-1, keepdims=True)
    var2 = jnp.mean((t - mu2) ** 2, axis=-1, keepdims=True)
    y_ref[...] = (t - mu2) * jax.lax.rsqrt(var2 + EPS) * ln2_g_ref[...] + ln2_b_ref[...]


@jax.jit
def transformer_encoder_layer(src, pos, params):
    """src, pos: (L, N, E) float32.  Returns (out (L,N,E), attn_weights[:,0,1:] (N,L-1))."""
    L, N, E = src.shape
    R = L * N
    hd = E // NHEAD
    scale = 1.0 / float(hd) ** 0.5

    # Free (metadata-only) flattening; rows are (l, b)-ordered.
    x2 = src.reshape(R, E)
    p2 = pos.reshape(R, E)

    # --- host-side weight prep: pre-transpose, fuse Q/K, fold the 1/sqrt(hd) scale ---
    in_w = params["in_proj_w"]          # (3E, E) packed q/k/v (PyTorch in_proj_weight)
    in_b = params["in_proj_b"]          # (1, 3E)
    wqk_t = jnp.concatenate([in_w[0:E, :].T * scale, in_w[E:2 * E, :].T],
                            axis=1).astype(jnp.bfloat16)            # (E, 2E)
    bqk = jnp.concatenate([in_b[:, 0:E] * scale, in_b[:, E:2 * E]], axis=1)  # (1, 2E)
    wv_t = in_w[2 * E:3 * E, :].T.astype(jnp.bfloat16)               # (E, E)
    bv = in_b[:, 2 * E:3 * E]                                        # (1, E)
    wo_t = params["out_proj_w"].T.astype(jnp.bfloat16)               # (E, E)
    bo = params["out_proj_b"]                                        # (1, E)
    w1_t = params["w1"].T.astype(jnp.bfloat16)                       # (E, F)
    w2_t = params["w2"].T.astype(jnp.bfloat16)                       # (F, E)

    inputs = [
        x2, p2,
        wqk_t, bqk, wv_t, bv,
        wo_t, bo,
        params["ln1_g"], params["ln1_b"], params["ln2_g"], params["ln2_b"],
        w1_t, params["b1"], w2_t, params["b2"],
    ]

    def full_spec(a):
        return pl.BlockSpec(a.shape, lambda i, _nd=a.ndim: (0,) * _nd)

    in_specs = [full_spec(a) for a in inputs]
    out_specs = (
        pl.BlockSpec((R, E), lambda i: (0, 0)),
        pl.BlockSpec((N, R), lambda i: (0, 0)),
    )
    out_shapes = (
        jax.ShapeDtypeStruct((R, E), jnp.float32),
        jax.ShapeDtypeStruct((N, R), jnp.float32),
    )

    y2, attn_rows = pl.pallas_call(
        functools.partial(_encoder_layer_kernel, nhead=NHEAD, n_batch=N),
        out_shape=out_shapes,
        grid=(1,),
        in_specs=in_specs,
        out_specs=out_specs,
        compiler_params=pltpu.CompilerParams(dimension_semantics=("arbitrary",)),
    )(*inputs)

    out = y2.reshape(L, N, E)                       # free reshape back to (L, N, E)

    # attn_rows[b, m*N + b'] is the head-averaged weight for (query 0 of batch b, key m
    # of batch b'); forward_post needs the b' == b diagonal, keys 1..L-1.
    attn_full = attn_rows.reshape(N, L, N)
    attn_q0 = attn_full[jnp.arange(N), :, jnp.arange(N)]            # (N, L)
    return out, attn_q0[:, 1:]


PARAM_ORDER = (
    "in_proj_w", "in_proj_b", "out_proj_w", "out_proj_b",
    "ln1_g", "ln1_b", "ln2_g", "ln2_b",
    "w1", "b1", "w2", "b2",
)


def _reference(src, pos, params):
    """Pure-JAX f32 reference of forward_post (eval mode)."""
    L, N, E = src.shape
    H, hd = NHEAD, E // NHEAD
    hi = jax.lax.Precision.HIGHEST
    x = jnp.transpose(src, (1, 0, 2))
    pe = jnp.transpose(pos, (1, 0, 2))
    qk = x + pe
    wq, wk, wv = jnp.split(params["in_proj_w"], 3, axis=0)
    bq, bk, bv = jnp.split(params["in_proj_b"][0], 3)
    q = jnp.einsum("nle,fe->nlf", qk, wq, precision=hi) + bq
    k = jnp.einsum("nle,fe->nlf", qk, wk, precision=hi) + bk
    v = jnp.einsum("nle,fe->nlf", x, wv, precision=hi) + bv
    q = q.reshape(N, L, H, hd).transpose(0, 2, 1, 3) / (hd ** 0.5)
    k = k.reshape(N, L, H, hd).transpose(0, 2, 1, 3)
    v = v.reshape(N, L, H, hd).transpose(0, 2, 1, 3)
    sc = jnp.einsum("nhqd,nhkd->nhqk", q, k, precision=hi)
    pw = jax.nn.softmax(sc, axis=-1)
    ctx = jnp.einsum("nhqk,nhkd->nhqd", pw, v, precision=hi)
    ctx = ctx.transpose(0, 2, 1, 3).reshape(N, L, E)
    attn_out = jnp.einsum("nle,fe->nlf", ctx, params["out_proj_w"], precision=hi) + params["out_proj_b"][0]

    def ln(z, g, b):
        mu = jnp.mean(z, -1, keepdims=True)
        var = jnp.mean((z - mu) ** 2, -1, keepdims=True)
        return (z - mu) / jnp.sqrt(var + EPS) * g[0] + b[0]

    s = ln(x + attn_out, params["ln1_g"], params["ln1_b"])
    h = jax.nn.relu(jnp.einsum("nle,fe->nlf", s, params["w1"], precision=hi) + params["b1"][0])
    f = jnp.einsum("nlf,ef->nle", h, params["w2"], precision=hi) + params["b2"][0]
    out = ln(s + f, params["ln2_g"], params["ln2_b"])
    return jnp.transpose(out, (1, 0, 2)), jnp.mean(pw, axis=1)[:, 0, 1:]


def init_params(key):
    ks = jax.random.split(key, 12)

    def nrm(k, shape, scale=0.1):
        return scale * jax.random.normal(k, shape, jnp.float32)

    return {
        "in_proj_w": nrm(ks[0], (3 * D_MODEL, D_MODEL)),
        "in_proj_b": nrm(ks[1], (1, 3 * D_MODEL)),
        "out_proj_w": nrm(ks[2], (D_MODEL, D_MODEL)),
        "out_proj_b": nrm(ks[3], (1, D_MODEL)),
        "ln1_g": 1.0 + nrm(ks[4], (1, D_MODEL)),
        "ln1_b": nrm(ks[5], (1, D_MODEL)),
        "ln2_g": 1.0 + nrm(ks[6], (1, D_MODEL)),
        "ln2_b": nrm(ks[7], (1, D_MODEL)),
        "w1": nrm(ks[8], (DIM_FF, D_MODEL)),
        "b1": nrm(ks[9], (1, DIM_FF)),
        "w2": nrm(ks[10], (D_MODEL, DIM_FF)),
        "b2": nrm(ks[11], (1, D_MODEL)),
    }


if __name__ == "__main__":
    L, N = 8, 2  # seq len, batch
    key = jax.random.PRNGKey(0)
    k_src, k_pos, k_par = jax.random.split(key, 3)
    src = jax.random.normal(k_src, (L, N, D_MODEL), jnp.float32)
    pos = jax.random.normal(k_pos, (L, N, D_MODEL), jnp.float32)
    params = init_params(k_par)

    out, attn = transformer_encoder_layer(src, pos, params)
    out = jax.block_until_ready(out)
    attn = jax.block_until_ready(attn)

    ref_out, ref_attn = _reference(src, pos, params)
    assert out.shape == (L, N, D_MODEL) and attn.shape == (N, L - 1)
    # bf16 MXU inputs (f32 accumulation) -> slightly looser tolerance than a pure-f32 run.
    np.testing.assert_allclose(np.asarray(out), np.asarray(ref_out), atol=2e-2, rtol=2e-2)
    np.testing.assert_allclose(np.asarray(attn), np.asarray(ref_attn), atol=2e-2, rtol=2e-2)

    # TODO(synk): attn_mask / key_padding_mask paths of nn.MultiheadAttention not implemented
    # (forward_post is called with None here); dropout is eval-mode identity.
    print("KERNEL_OK")
</pallas_src>

<mosaic_0001>
module attributes {stable_mosaic.version = 11 : i64} {
  func.func @_encoder_layer_kernel(%arg0: i32, %arg1: memref<16x32xf32, #tpu.memory_space<vmem>>, %arg2: memref<16x32xf32, #tpu.memory_space<vmem>>, %arg3: memref<32x64xbf16, #tpu.memory_space<vmem>>, %arg4: memref<1x64xf32, #tpu.memory_space<vmem>>, %arg5: memref<32x32xbf16, #tpu.memory_space<vmem>>, %arg6: memref<1x32xf32, #tpu.memory_space<vmem>>, %arg7: memref<32x32xbf16, #tpu.memory_space<vmem>>, %arg8: memref<1x32xf32, #tpu.memory_space<vmem>>, %arg9: memref<1x32xf32, #tpu.memory_space<vmem>>, %arg10: memref<1x32xf32, #tpu.memory_space<vmem>>, %arg11: memref<1x32xf32, #tpu.memory_space<vmem>>, %arg12: memref<1x32xf32, #tpu.memory_space<vmem>>, %arg13: memref<32x64xbf16, #tpu.memory_space<vmem>>, %arg14: memref<1x64xf32, #tpu.memory_space<vmem>>, %arg15: memref<64x32xbf16, #tpu.memory_space<vmem>>, %arg16: memref<1x32xf32, #tpu.memory_space<vmem>>, %arg17: memref<16x32xf32, #tpu.memory_space<vmem>>, %arg18: memref<2x16xf32, #tpu.memory_space<vmem>>) attributes {dimension_semantics = [#tpu.dimension_semantics<arbitrary>], iteration_bounds = array<i64: 1>, scalar_prefetch = 0 : i64, scratch_operands = 0 : i64, tpu.core_type = #tpu.core_type<tc>, window_params = [{pipeline_mode = #tpu.pipeline_mode<synchronous>, transform_indices = @transform_0, window_bounds = array<i64: 16, 32>}, {pipeline_mode = #tpu.pipeline_mode<synchronous>, transform_indices = @transform_1, window_bounds = array<i64: 16, 32>}, {pipeline_mode = #tpu.pipeline_mode<synchronous>, transform_indices = @transform_2, window_bounds = array<i64: 32, 64>}, {pipeline_mode = #tpu.pipeline_mode<synchronous>, transform_indices = @transform_3, window_bounds = array<i64: 1, 64>}, {pipeline_mode = #tpu.pipeline_mode<synchronous>, transform_indices = @transform_4, window_bounds = array<i64: 32, 32>}, {pipeline_mode = #tpu.pipeline_mode<synchronous>, transform_indices = @transform_5, window_bounds = array<i64: 1, 32>}, {pipeline_mode = #tpu.pipeline_mode<synchronous>, transform_indices = @transform_6, window_bounds = array<i64: 32, 32>}, {pipeline_mode = #tpu.pipeline_mode<synchronous>, transform_indices = @transform_7, window_bounds = array<i64: 1, 32>}, {pipeline_mode = #tpu.pipeline_mode<synchronous>, transform_indices = @transform_8, window_bounds = array<i64: 1, 32>}, {pipeline_mode = #tpu.pipeline_mode<synchronous>, transform_indices = @transform_9, window_bounds = array<i64: 1, 32>}, {pipeline_mode = #tpu.pipeline_mode<synchronous>, transform_indices = @transform_10, window_bounds = array<i64: 1, 32>}, {pipeline_mode = #tpu.pipeline_mode<synchronous>, transform_indices = @transform_11, window_bounds = array<i64: 1, 32>}, {pipeline_mode = #tpu.pipeline_mode<synchronous>, transform_indices = @transform_12, window_bounds = array<i64: 32, 64>}, {pipeline_mode = #tpu.pipeline_mode<synchronous>, transform_indices = @transform_13, window_bounds = array<i64: 1, 64>}, {pipeline_mode = #tpu.pipeline_mode<synchronous>, transform_indices = @transform_14, window_bounds = array<i64: 64, 32>}, {pipeline_mode = #tpu.pipeline_mode<synchronous>, transform_indices = @transform_15, window_bounds = array<i64: 1, 32>}, {pipeline_mode = #tpu.pipeline_mode<synchronous>, transform_indices = @transform_16, window_bounds = array<i64: 16, 32>}, {pipeline_mode = #tpu.pipeline_mode<synchronous>, transform_indices = @transform_17, window_bounds = array<i64: 2, 16>}]} {
    %c0 = arith.constant 0 : index
    %c0_0 = arith.constant 0 : index
    %0 = vector.load %arg1[%c0, %c0_0] : memref<16x32xf32, #tpu.memory_space<vmem>>, vector<16x32xf32>
    %c0_1 = arith.constant 0 : index
    %c0_2 = arith.constant 0 : index
    %1 = vector.load %arg2[%c0_1, %c0_2] : memref<16x32xf32, #tpu.memory_space<vmem>>, vector<16x32xf32>
    %2 = arith.addf %0, %1 : vector<16x32xf32>
    %3 = arith.truncf %2 : vector<16x32xf32> to vector<16x32xbf16>
    %4 = arith.truncf %0 : vector<16x32xf32> to vector<16x32xbf16>
    %c0_3 = arith.constant 0 : index
    %c0_4 = arith.constant 0 : index
    %5 = vector.load %arg3[%c0_3, %c0_4] : memref<32x64xbf16, #tpu.memory_space<vmem>>, vector<32x64xbf16>
    %cst = arith.constant dense<0.000000e+00> : vector<16x64xf32>
    %6 = tpu.matmul %3, %5, %cst {dimension_numbers = #tpu.dot_dimension_numbers<[1], [0], [0], [1], [0, 0, 1, 1], [], []>} : vector<16x32xbf16>, vector<32x64xbf16>, vector<16x64xf32> -> vector<16x64xf32>
    %c0_5 = arith.constant 0 : index
    %c0_6 = arith.constant 0 : index
    %7 = vector.load %arg4[%c0_5, %c0_6] : memref<1x64xf32, #tpu.memory_space<vmem>>, vector<1x64xf32>
    %8 = vector.broadcast %7 : vector<1x64xf32> to vector<16x64xf32>
    %9 = arith.addf %6, %8 : vector<16x64xf32>
    %c0_7 = arith.constant 0 : index
    %c0_8 = arith.constant 0 : index
    %10 = vector.load %arg5[%c0_7, %c0_8] : memref<32x32xbf16, #tpu.memory_space<vmem>>, vector<32x32xbf16>
    %cst_9 = arith.constant dense<0.000000e+00> : vector<16x32xf32>
    %11 = tpu.matmul %4, %10, %cst_9 {dimension_numbers = #tpu.dot_dimension_numbers<[1], [0], [0], [1], [0, 0, 1, 1], [], []>} : vector<16x32xbf16>, vector<32x32xbf16>, vector<16x32xf32> -> vector<16x32xf32>
    %c0_10 = arith.constant 0 : index
    %c0_11 = arith.constant 0 : index
    %12 = vector.load %arg6[%c0_10, %c0_11] : memref<1x32xf32, #tpu.memory_space<vmem>>, vector<1x32xf32>
    %13 = vector.broadcast %12 : vector<1x32xf32> to vector<16x32xf32>
    %14 = arith.addf %11, %13 : vector<16x32xf32>
    %15 = arith.truncf %9 : vector<16x64xf32> to vector<16x64xbf16>
    %16 = arith.truncf %14 : vector<16x32xf32> to vector<16x32xbf16>
    %17 = tpu.iota {dimensions = array<i32: 0>} : vector<16x16xi32>
    %c2_i32 = arith.constant 2 : i32
    %c0_i32 = arith.constant 0 : i32
    %18 = arith.cmpi eq, %c2_i32, %c0_i32 : i32
    %c1_i32 = arith.constant 1 : i32
    %19 = arith.select %18, %c1_i32, %c2_i32 : i32
    %20 = vector.broadcast %19 : i32 to vector<16x16xi32>
    %21 = arith.remsi %17, %20 : vector<16x16xi32>
    %c0_i32_12 = arith.constant 0 : i32
    %22 = vector.broadcast %c0_i32_12 : i32 to vector<16x16xi32>
    %23 = arith.cmpi ne, %21, %22 : vector<16x16xi32>
    %c0_i32_13 = arith.constant 0 : i32
    %24 = vector.broadcast %c0_i32_13 : i32 to vector<16x16xi32>
    %25 = arith.cmpi slt, %21, %24 : vector<16x16xi32>
    %c0_i32_14 = arith.constant 0 : i32
    %26 = arith.cmpi slt, %19, %c0_i32_14 : i32
    %27 = vector.broadcast %26 : i1 to vector<16x16xi1>
    %28 = vector.broadcast %27 : vector<16x16xi1> to vector<16x16xi1>
    %29 = arith.xori %25, %28 : vector<16x16xi1>
    %30 = arith.andi %29, %23 : vector<16x16xi1>
    %31 = vector.broadcast %19 : i32 to vector<16x16xi32>
    %32 = arith.addi %21, %31 : vector<16x16xi32>
    %33 = arith.select %30, %32, %21 : vector<16x16xi1>, vector<16x16xi32>
    %34 = tpu.iota {dimensions = array<i32: 1>} : vector<16x16xi32>
    %c2_i32_15 = arith.constant 2 : i32
    %c0_i32_16 = arith.constant 0 : i32
    %35 = arith.cmpi eq, %c2_i32_15, %c0_i32_16 : i32
    %c1_i32_17 = arith.constant 1 : i32
    %36 = arith.select %35, %c1_i32_17, %c2_i32_15 : i32
    %37 = vector.broadcast %36 : i32 to vector<16x16xi32>
    %38 = arith.remsi %34, %37 : vector<16x16xi32>
    %c0_i32_18 = arith.constant 0 : i32
    %39 = vector.broadcast %c0_i32_18 : i32 to vector<16x16xi32>
    %40 = arith.cmpi ne, %38, %39 : vector<16x16xi32>
    %c0_i32_19 = arith.constant 0 : i32
    %41 = vector.broadcast %c0_i32_19 : i32 to vector<16x16xi32>
    %42 = arith.cmpi slt, %38, %41 : vector<16x16xi32>
    %c0_i32_20 = arith.constant 0 : i32
    %43 = arith.cmpi slt, %36, %c0_i32_20 : i32
    %44 = vector.broadcast %43 : i1 to vector<16x16xi1>
    %45 = vector.broadcast %44 : vector<16x16xi1> to vector<16x16xi1>
    %46 = arith.xori %42, %45 : vector<16x16xi1>
    %47 = arith.andi %46, %40 : vector<16x16xi1>
    %48 = vector.broadcast %36 : i32 to vector<16x16xi32>
    %49 = arith.addi %38, %48 : vector<16x16xi32>
    %50 = arith.select %47, %49, %38 : vector<16x16xi1>, vector<16x16xi32>
    %51 = arith.cmpi eq, %33, %50 : vector<16x16xi32>
    %cst_21 = arith.constant 0.000000e+00 : f32
    %cst_22 = arith.constant -1.000000e+30 : f32
    %52 = vector.broadcast %cst_21 : f32 to vector<16x16xf32>
    %53 = vector.broadcast %cst_22 : f32 to vector<16x16xf32>
    %54 = arith.select %51, %52, %53 : vector<16x16xi1>, vector<16x16xf32>
    %cst_23 = arith.constant 0.000000e+00 : f32
    %55 = vector.broadcast %cst_23 : f32 to vector<16x32xf32>
    %cst_24 = arith.constant 0.000000e+00 : f32
    %56 = vector.broadcast %cst_24 : f32 to vector<2x16xf32>
    %57 = vector.extract_strided_slice %15 {offsets = [0, 0], sizes = [16, 8], strides = [1, 1]} : vector<16x64xbf16> to vector<16x8xbf16>
    %58 = vector.extract_strided_slice %15 {offsets = [0, 32], sizes = [16, 8], strides = [1, 1]} : vector<16x64xbf16> to vector<16x8xbf16>
    %59 = vector.extract_strided_slice %16 {offsets = [0, 0], sizes = [16, 8], strides = [1, 1]} : vector<16x32xbf16> to vector<16x8xbf16>
    %cst_25 = arith.constant dense<0.000000e+00> : vector<16x16xf32>
    %60 = tpu.matmul %57, %58, %cst_25 {dimension_numbers = #tpu.dot_dimension_numbers<[1], [1], [0], [0], [0, 0, 1, 0], [], []>} : vector<16x8xbf16>, vector<16x8xbf16>, vector<16x16xf32> -> vector<16x16xf32>
    %61 = arith.addf %60, %54 : vector<16x16xf32>
    %cst_26 = arith.constant dense<0xFF800000> : vector<16xf32>
    %62 = vector.multi_reduction <maximumf>, %61, %cst_26 [1] : vector<16x16xf32> to vector<16xf32>
    %63 = vector.shape_cast %62 : vector<16xf32> to vector<16x1xf32>
    %64 = vector.broadcast %63 : vector<16x1xf32> to vector<16x16xf32>
    %65 = arith.subf %61, %64 : vector<16x16xf32>
    %66 = math.exp %65 : vector<16x16xf32>
    %cst_27 = arith.constant dense<0.000000e+00> : vector<16xf32>
    %67 = vector.multi_reduction <add>, %66, %cst_27 [1] : vector<16x16xf32> to vector<16xf32>
    %68 = vector.shape_cast %67 : vector<16xf32> to vector<16x1xf32>
    %69 = tpu.reciprocal %68 {approx = true} : vector<16x1xf32> -> vector<16x1xf32>
    %70 = vector.broadcast %69 : vector<16x1xf32> to vector<16x16xf32>
    %71 = arith.mulf %66, %70 : vector<16x16xf32>
    %72 = vector.extract_strided_slice %71 {offsets = [0, 0], sizes = [2, 16], strides = [1, 1]} : vector<16x16xf32> to vector<2x16xf32>
    %73 = arith.addf %56, %72 : vector<2x16xf32>
    %74 = arith.truncf %71 : vector<16x16xf32> to vector<16x16xbf16>
    %cst_28 = arith.constant dense<0.000000e+00> : vector<16x8xf32>
    %75 = tpu.matmul %74, %59, %cst_28 {dimension_numbers = #tpu.dot_dimension_numbers<[1], [0], [0], [1], [0, 0, 1, 1], [], []>} : vector<16x16xbf16>, vector<16x8xbf16>, vector<16x8xf32> -> vector<16x8xf32>
    %c0_29 = arith.constant 0 : index
    %c0_30 = arith.constant 0 : index
    %76 = vector.load %arg7[%c0_29, %c0_30] : memref<32x32xbf16, #tpu.memory_space<vmem>>, vector<8x32xbf16>
    %77 = arith.truncf %75 : vector<16x8xf32> to vector<16x8xbf16>
    %cst_31 = arith.constant dense<0.000000e+00> : vector<16x32xf32>
    %78 = tpu.matmul %77, %76, %cst_31 {dimension_numbers = #tpu.dot_dimension_numbers<[1], [0], [0], [1], [0, 0, 1, 1], [], []>} : vector<16x8xbf16>, vector<8x32xbf16>, vector<16x32xf32> -> vector<16x32xf32>
    %79 = arith.addf %55, %78 : vector<16x32xf32>
    %80 = vector.extract_strided_slice %15 {offsets = [0, 8], sizes = [16, 8], strides = [1, 1]} : vector<16x64xbf16> to vector<16x8xbf16>
    %81 = vector.extract_strided_slice %15 {offsets = [0, 40], sizes = [16, 8], strides = [1, 1]} : vector<16x64xbf16> to vector<16x8xbf16>
    %82 = vector.extract_strided_slice %16 {offsets = [0, 8], sizes = [16, 8], strides = [1, 1]} : vector<16x32xbf16> to vector<16x8xbf16>
    %cst_32 = arith.constant dense<0.000000e+00> : vector<16x16xf32>
    %83 = tpu.matmul %80, %81, %cst_32 {dimension_numbers = #tpu.dot_dimension_numbers<[1], [1], [0], [0], [0, 0, 1, 0], [], []>} : vector<16x8xbf16>, vector<16x8xbf16>, vector<16x16xf32> -> vector<16x16xf32>
    %84 = arith.addf %83, %54 : vector<16x16xf32>
    %cst_33 = arith.constant dense<0xFF800000> : vector<16xf32>
    %85 = vector.multi_reduction <maximumf>, %84, %cst_33 [1] : vector<16x16xf32> to vector<16xf32>
    %86 = vector.shape_cast %85 : vector<16xf32> to vector<16x1xf32>
    %87 = vector.broadcast %86 : vector<16x1xf32> to vector<16x16xf32>
    %88 = arith.subf %84, %87 : vector<16x16xf32>
    %89 = math.exp %88 : vector<16x16xf32>
    %cst_34 = arith.constant dense<0.000000e+00> : vector<16xf32>
    %90 = vector.multi_reduction <add>, %89, %cst_34 [1] : vector<16x16xf32> to vector<16xf32>
    %91 = vector.shape_cast %90 : vector<16xf32> to vector<16x1xf32>
    %92 = tpu.reciprocal %91 {approx = true} : vector<16x1xf32> -> vector<16x1xf32>
    %93 = vector.broadcast %92 : vector<16x1xf32> to vector<16x16xf32>
    %94 = arith.mulf %89, %93 : vector<16x16xf32>
    %95 = vector.extract_strided_slice %94 {offsets = [0, 0], sizes = [2, 16], strides = [1, 1]} : vector<16x16xf32> to vector<2x16xf32>
    %96 = arith.addf %73, %95 : vector<2x16xf32>
    %97 = arith.truncf %94 : vector<16x16xf32> to vector<16x16xbf16>
    %cst_35 = arith.constant dense<0.000000e+00> : vector<16x8xf32>
    %98 = tpu.matmul %97, %82, %cst_35 {dimension_numbers = #tpu.dot_dimension_numbers<[1], [0], [0], [1], [0, 0, 1, 1], [], []>} : vector<16x16xbf16>, vector<16x8xbf16>, vector<16x8xf32> -> vector<16x8xf32>
    %c8 = arith.constant 8 : index
    %c0_36 = arith.constant 0 : index
    %99 = vector.load %arg7[%c8, %c0_36] : memref<32x32xbf16, #tpu.memory_space<vmem>>, vector<8x32xbf16>
    %100 = arith.truncf %98 : vector<16x8xf32> to vector<16x8xbf16>
    %cst_37 = arith.constant dense<0.000000e+00> : vector<16x32xf32>
    %101 = tpu.matmul %100, %99, %cst_37 {dimension_numbers = #tpu.dot_dimension_numbers<[1], [0], [0], [1], [0, 0, 1, 1], [], []>} : vector<16x8xbf16>, vector<8x32xbf16>, vector<16x32xf32> -> vector<16x32xf32>
    %102 = arith.addf %79, %101 : vector<16x32xf32>
    %103 = vector.extract_strided_slice %15 {offsets = [0, 16], sizes = [16, 8], strides = [1, 1]} : vector<16x64xbf16> to vector<16x8xbf16>
    %104 = vector.extract_strided_slice %15 {offsets = [0, 48], sizes = [16, 8], strides = [1, 1]} : vector<16x64xbf16> to vector<16x8xbf16>
    %105 = vector.extract_strided_slice %16 {offsets = [0, 16], sizes = [16, 8], strides = [1, 1]} : vector<16x32xbf16> to vector<16x8xbf16>
    %cst_38 = arith.constant dense<0.000000e+00> : vector<16x16xf32>
    %106 = tpu.matmul %103, %104, %cst_38 {dimension_numbers = #tpu.dot_dimension_numbers<[1], [1], [0], [0], [0, 0, 1, 0], [], []>} : vector<16x8xbf16>, vector<16x8xbf16>, vector<16x16xf32> -> vector<16x16xf32>
    %107 = arith.addf %106, %54 : vector<16x16xf32>
    %cst_39 = arith.constant dense<0xFF800000> : vector<16xf32>
    %108 = vector.multi_reduction <maximumf>, %107, %cst_39 [1] : vector<16x16xf32> to vector<16xf32>
    %109 = vector.shape_cast %108 : vector<16xf32> to vector<16x1xf32>
    %110 = vector.broadcast %109 : vector<16x1xf32> to vector<16x16xf32>
    %111 = arith.subf %107, %110 : vector<16x16xf32>
    %112 = math.exp %111 : vector<16x16xf32>
    %cst_40 = arith.constant dense<0.000000e+00> : vector<16xf32>
    %113 = vector.multi_reduction <add>, %112, %cst_40 [1] : vector<16x16xf32> to vector<16xf32>
    %114 = vector.shape_cast %113 : vector<16xf32> to vector<16x1xf32>
    %115 = tpu.reciprocal %114 {approx = true} : vector<16x1xf32> -> vector<16x1xf32>
    %116 = vector.broadcast %115 : vector<16x1xf32> to vector<16x16xf32>
    %117 = arith.mulf %112, %116 : vector<16x16xf32>
    %118 = vector.extract_strided_slice %117 {offsets = [0, 0], sizes = [2, 16], strides = [1, 1]} : vector<16x16xf32> to vector<2x16xf32>
    %119 = arith.addf %96, %118 : vector<2x16xf32>
    %120 = arith.truncf %117 : vector<16x16xf32> to vector<16x16xbf16>
    %cst_41 = arith.constant dense<0.000000e+00> : vector<16x8xf32>
    %121 = tpu.matmul %120, %105, %cst_41 {dimension_numbers = #tpu.dot_dimension_numbers<[1], [0], [0], [1], [0, 0, 1, 1], [], []>} : vector<16x16xbf16>, vector<16x8xbf16>, vector<16x8xf32> -> vector<16x8xf32>
    %c16 = arith.constant 16 : index
    %c0_42 = arith.constant 0 : index
    %122 = vector.load %arg7[%c16, %c0_42] : memref<32x32xbf16, #tpu.memory_space<vmem>>, vector<8x32xbf16>
    %123 = arith.truncf %121 : vector<16x8xf32> to vector<16x8xbf16>
    %cst_43 = arith.constant dense<0.000000e+00> : vector<16x32xf32>
    %124 = tpu.matmul %123, %122, %cst_43 {dimension_numbers = #tpu.dot_dimension_numbers<[1], [0], [0], [1], [0, 0, 1, 1], [], []>} : vector<16x8xbf16>, vector<8x32xbf16>, vector<16x32xf32> -> vector<16x32xf32>
    %125 = arith.addf %102, %124 : vector<16x32xf32>
    %126 = vector.extract_strided_slice %15 {offsets = [0, 24], sizes = [16, 8], strides = [1, 1]} : vector<16x64xbf16> to vector<16x8xbf16>
    %127 = vector.extract_strided_slice %15 {offsets = [0, 56], sizes = [16, 8], strides = [1, 1]} : vector<16x64xbf16> to vector<16x8xbf16>
    %128 = vector.extract_strided_slice %16 {offsets = [0, 24], sizes = [16, 8], strides = [1, 1]} : vector<16x32xbf16> to vector<16x8xbf16>
    %cst_44 = arith.constant dense<0.000000e+00> : vector<16x16xf32>
    %129 = tpu.matmul %126, %127, %cst_44 {dimension_numbers = #tpu.dot_dimension_numbers<[1], [1], [0], [0], [0, 0, 1, 0], [], []>} : vector<16x8xbf16>, vector<16x8xbf16>, vector<16x16xf32> -> vector<16x16xf32>
    %130 = arith.addf %129, %54 : vector<16x16xf32>
    %cst_45 = arith.constant dense<0xFF800000> : vector<16xf32>
    %131 = vector.multi_reduction <maximumf>, %130, %cst_45 [1] : vector<16x16xf32> to vector<16xf32>
    %132 = vector.shape_cast %131 : vector<16xf32> to vector<16x1xf32>
    %133 = vector.broadcast %132 : vector<16x1xf32> to vector<16x16xf32>
    %134 = arith.subf %130, %133 : vector<16x16xf32>
    %135 = math.exp %134 : vector<16x16xf32>
    %cst_46 = arith.constant dense<0.000000e+00> : vector<16xf32>
    %136 = vector.multi_reduction <add>, %135, %cst_46 [1] : vector<16x16xf32> to vector<16xf32>
    %137 = vector.shape_cast %136 : vector<16xf32> to vector<16x1xf32>
    %138 = tpu.reciprocal %137 {approx = true} : vector<16x1xf32> -> vector<16x1xf32>
    %139 = vector.broadcast %138 : vector<16x1xf32> to vector<16x16xf32>
    %140 = arith.mulf %135, %139 : vector<16x16xf32>
    %141 = vector.extract_strided_slice %140 {offsets = [0, 0], sizes = [2, 16], strides = [1, 1]} : vector<16x16xf32> to vector<2x16xf32>
    %142 = arith.addf %119, %141 : vector<2x16xf32>
    %143 = arith.truncf %140 : vector<16x16xf32> to vector<16x16xbf16>
    %cst_47 = arith.constant dense<0.000000e+00> : vector<16x8xf32>
    %144 = tpu.matmul %143, %128, %cst_47 {dimension_numbers = #tpu.dot_dimension_numbers<[1], [0], [0], [1], [0, 0, 1, 1], [], []>} : vector<16x16xbf16>, vector<16x8xbf16>, vector<16x8xf32> -> vector<16x8xf32>
    %c24 = arith.constant 24 : index
    %c0_48 = arith.constant 0 : index
    %145 = vector.load %arg7[%c24, %c0_48] : memref<32x32xbf16, #tpu.memory_space<vmem>>, vector<8x32xbf16>
    %146 = arith.truncf %144 : vector<16x8xf32> to vector<16x8xbf16>
    %cst_49 = arith.constant dense<0.000000e+00> : vector<16x32xf32>
    %147 = tpu.matmul %146, %145, %cst_49 {dimension_numbers = #tpu.dot_dimension_numbers<[1], [0], [0], [1], [0, 0, 1, 1], [], []>} : vector<16x8xbf16>, vector<8x32xbf16>, vector<16x32xf32> -> vector<16x32xf32>
    %148 = arith.addf %125, %147 : vector<16x32xf32>
    %cst_50 = arith.constant 2.500000e-01 : f32
    %149 = vector.broadcast %cst_50 : f32 to vector<2x16xf32>
    %150 = arith.mulf %142, %149 : vector<2x16xf32>
    %c0_51 = arith.constant 0 : index
    %c0_52 = arith.constant 0 : index
    %151 = vector.load %arg18[%c0_51, %c0_52] : memref<2x16xf32, #tpu.memory_space<vmem>>, vector<2x16xf32>
    tpu.vector_store %arg18[%c0_51, %c0_52], %150 {strides = array<i32>} : memref<2x16xf32, #tpu.memory_space<vmem>>, vector<2x16xf32>,
    %c0_53 = arith.constant 0 : index
    %c0_54 = arith.constant 0 : index
    %152 = vector.load %arg8[%c0_53, %c0_54] : memref<1x32xf32, #tpu.memory_space<vmem>>, vector<1x32xf32>
    %153 = vector.broadcast %152 : vector<1x32xf32> to vector<16x32xf32>
    %154 = arith.addf %148, %153 : vector<16x32xf32>
    %155 = arith.addf %0, %154 : vector<16x32xf32>
    %cst_55 = arith.constant dense<0.000000e+00> : vector<16xf32>
    %156 = vector.multi_reduction <add>, %155, %cst_55 [1] : vector<16x32xf32> to vector<16xf32>
    %157 = vector.shape_cast %156 : vector<16xf32> to vector<16x1xf32>
    %cst_56 = arith.constant 3.200000e+01 : f32
    %158 = vector.broadcast %cst_56 : f32 to vector<16x1xf32>
    %159 = arith.divf %157, %158 : vector<16x1xf32>
    %160 = vector.broadcast %159 : vector<16x1xf32> to vector<16x32xf32>
    %161 = arith.subf %155, %160 : vector<16x32xf32>
    %162 = arith.mulf %161, %161 : vector<16x32xf32>
    %cst_57 = arith.constant dense<0.000000e+00> : vector<16xf32>
    %163 = vector.multi_reduction <add>, %162, %cst_57 [1] : vector<16x32xf32> to vector<16xf32>
    %164 = vector.shape_cast %163 : vector<16xf32> to vector<16x1xf32>
    %cst_58 = arith.constant 3.200000e+01 : f32
    %165 = vector.broadcast %cst_58 : f32 to vector<16x1xf32>
    %166 = arith.divf %164, %165 : vector<16x1xf32>
    %167 = vector.broadcast %159 : vector<16x1xf32> to vector<16x32xf32>
    %168 = arith.subf %155, %167 : vector<16x32xf32>
    %cst_59 = arith.constant 9.99999974E-6 : f32
    %169 = vector.broadcast %cst_59 : f32 to vector<16x1xf32>
    %170 = arith.addf %166, %169 : vector<16x1xf32>
    %171 = math.rsqrt %170 : vector<16x1xf32>
    %172 = vector.broadcast %171 : vector<16x1xf32> to vector<16x32xf32>
    %173 = arith.mulf %168, %172 : vector<16x32xf32>
    %c0_60 = arith.constant 0 : index
    %c0_61 = arith.constant 0 : index
    %174 = vector.load %arg9[%c0_60, %c0_61] : memref<1x32xf32, #tpu.memory_space<vmem>>, vector<1x32xf32>
    %175 = vector.broadcast %174 : vector<1x32xf32> to vector<16x32xf32>
    %176 = arith.mulf %173, %175 : vector<16x32xf32>
    %c0_62 = arith.constant 0 : index
    %c0_63 = arith.constant 0 : index
    %177 = vector.load %arg10[%c0_62, %c0_63] : memref<1x32xf32, #tpu.memory_space<vmem>>, vector<1x32xf32>
    %178 = vector.broadcast %177 : vector<1x32xf32> to vector<16x32xf32>
    %179 = arith.addf %176, %178 : vector<16x32xf32>
    %180 = arith.truncf %179 : vector<16x32xf32> to vector<16x32xbf16>
    %c0_64 = arith.constant 0 : index
    %c0_65 = arith.constant 0 : index
    %181 = vector.load %arg13[%c0_64, %c0_65] : memref<32x64xbf16, #tpu.memory_space<vmem>>, vector<32x64xbf16>
    %cst_66 = arith.constant dense<0.000000e+00> : vector<16x64xf32>
    %182 = tpu.matmul %180, %181, %cst_66 {dimension_numbers = #tpu.dot_dimension_numbers<[1], [0], [0], [1], [0, 0, 1, 1], [], []>} : vector<16x32xbf16>, vector<32x64xbf16>, vector<16x64xf32> -> vector<16x64xf32>
    %c0_67 = arith.constant 0 : index
    %c0_68 = arith.constant 0 : index
    %183 = vector.load %arg14[%c0_67, %c0_68] : memref<1x64xf32, #tpu.memory_space<vmem>>, vector<1x64xf32>
    %184 = vector.broadcast %183 : vector<1x64xf32> to vector<16x64xf32>
    %185 = arith.addf %182, %184 : vector<16x64xf32>
    %cst_69 = arith.constant 0.000000e+00 : f32
    %186 = vector.broadcast %cst_69 : f32 to vector<16x64xf32>
    %187 = arith.maximumf %185, %186 : vector<16x64xf32>
    %188 = arith.truncf %187 : vector<16x64xf32> to vector<16x64xbf16>
    %c0_70 = arith.constant 0 : index
    %c0_71 = arith.constant 0 : index
    %189 = vector.load %arg15[%c0_70, %c0_71] : memref<64x32xbf16, #tpu.memory_space<vmem>>, vector<64x32xbf16>
    %cst_72 = arith.constant dense<0.000000e+00> : vector<16x32xf32>
    %190 = tpu.matmul %188, %189, %cst_72 {dimension_numbers = #tpu.dot_dimension_numbers<[1], [0], [0], [1], [0, 0, 1, 1], [], []>} : vector<16x64xbf16>, vector<64x32xbf16>, vector<16x32xf32> -> vector<16x32xf32>
    %c0_73 = arith.constant 0 : index
    %c0_74 = arith.constant 0 : index
    %191 = vector.load %arg16[%c0_73, %c0_74] : memref<1x32xf32, #tpu.memory_space<vmem>>, vector<1x32xf32>
    %192 = vector.broadcast %191 : vector<1x32xf32> to vector<16x32xf32>
    %193 = arith.addf %190, %192 : vector<16x32xf32>
    %194 = arith.addf %179, %193 : vector<16x32xf32>
    %cst_75 = arith.constant dense<0.000000e+00> : vector<16xf32>
    %195 = vector.multi_reduction <add>, %194, %cst_75 [1] : vector<16x32xf32> to vector<16xf32>
    %196 = vector.shape_cast %195 : vector<16xf32> to vector<16x1xf32>
    %cst_76 = arith.constant 3.200000e+01 : f32
    %197 = vector.broadcast %cst_76 : f32 to vector<16x1xf32>
    %198 = arith.divf %196, %197 : vector<16x1xf32>
    %199 = vector.broadcast %198 : vector<16x1xf32> to vector<16x32xf32>
    %200 = arith.subf %194, %199 : vector<16x32xf32>
    %201 = arith.mulf %200, %200 : vector<16x32xf32>
    %cst_77 = arith.constant dense<0.000000e+00> : vector<16xf32>
    %202 = vector.multi_reduction <add>, %201, %cst_77 [1] : vector<16x32xf32> to vector<16xf32>
    %203 = vector.shape_cast %202 : vector<16xf32> to vector<16x1xf32>
    %cst_78 = arith.constant 3.200000e+01 : f32
    %204 = vector.broadcast %cst_78 : f32 to vector<16x1xf32>
    %205 = arith.divf %203, %204 : vector<16x1xf32>
    %206 = vector.broadcast %198 : vector<16x1xf32> to vector<16x32xf32>
    %207 = arith.subf %194, %206 : vector<16x32xf32>
    %cst_79 = arith.constant 9.99999974E-6 : f32
    %208 = vector.broadcast %cst_79 : f32 to vector<16x1xf32>
    %209 = arith.addf %205, %208 : vector<16x1xf32>
    %210 = math.rsqrt %209 : vector<16x1xf32>
    %211 = vector.broadcast %210 : vector<16x1xf32> to vector<16x32xf32>
    %212 = arith.mulf %207, %211 : vector<16x32xf32>
    %c0_80 = arith.constant 0 : index
    %c0_81 = arith.constant 0 : index
    %213 = vector.load %arg11[%c0_80, %c0_81] : memref<1x32xf32, #tpu.memory_space<vmem>>, vector<1x32xf32>
    %214 = vector.broadcast %213 : vector<1x32xf32> to vector<16x32xf32>
    %215 = arith.mulf %212, %214 : vector<16x32xf32>
    %c0_82 = arith.constant 0 : index
    %c0_83 = arith.constant 0 : index
    %216 = vector.load %arg12[%c0_82, %c0_83] : memref<1x32xf32, #tpu.memory_space<vmem>>, vector<1x32xf32>
    %217 = vector.broadcast %216 : vector<1x32xf32> to vector<16x32xf32>
    %218 = arith.addf %215, %217 : vector<16x32xf32>
    %c0_84 = arith.constant 0 : index
    %c0_85 = arith.constant 0 : index
    %219 = vector.load %arg17[%c0_84, %c0_85] : memref<16x32xf32, #tpu.memory_space<vmem>>, vector<16x32xf32>
    tpu.vector_store %arg17[%c0_84, %c0_85], %218 {strides = array<i32>} : memref<16x32xf32, #tpu.memory_space<vmem>>, vector<16x32xf32>,
    return
  }
  func.func @transform_0(%arg0: i32) -> (i32, i32) {
    %c0_i32 = arith.constant 0 : i32
    %c0_i32_0 = arith.constant 0 : i32
    %c0_i32_1 = arith.constant 0 : i32
    return %c0_i32, %c0_i32_0 : i32, i32
  }
  func.func @transform_1(%arg0: i32) -> (i32, i32) {
    %c0_i32 = arith.constant 0 : i32
    %c0_i32_0 = arith.constant 0 : i32
    %c0_i32_1 = arith.constant 0 : i32
    return %c0_i32, %c0_i32_0 : i32, i32
  }
  func.func @transform_2(%arg0: i32) -> (i32, i32) {
    %c0_i32 = arith.constant 0 : i32
    %c0_i32_0 = arith.constant 0 : i32
    %c0_i32_1 = arith.constant 0 : i32
    return %c0_i32, %c0_i32_0 : i32, i32
  }
  func.func @transform_3(%arg0: i32) -> (i32, i32) {
    %c0_i32 = arith.constant 0 : i32
    %c0_i32_0 = arith.constant 0 : i32
    %c0_i32_1 = arith.constant 0 : i32
    return %c0_i32, %c0_i32_0 : i32, i32
  }
  func.func @transform_4(%arg0: i32) -> (i32, i32) {
    %c0_i32 = arith.constant 0 : i32
    %c0_i32_0 = arith.constant 0 : i32
    %c0_i32_1 = arith.constant 0 : i32
    return %c0_i32, %c0_i32_0 : i32, i32
  }
  func.func @transform_5(%arg0: i32) -> (i32, i32) {
    %c0_i32 = arith.constant 0 : i32
    %c0_i32_0 = arith.constant 0 : i32
    %c0_i32_1 = arith.constant 0 : i32
    return %c0_i32, %c0_i32_0 : i32, i32
  }
  func.func @transform_6(%arg0: i32) -> (i32, i32) {
    %c0_i32 = arith.constant 0 : i32
    %c0_i32_0 = arith.constant 0 : i32
    %c0_i32_1 = arith.constant 0 : i32
    return %c0_i32, %c0_i32_0 : i32, i32
  }
  func.func @transform_7(%arg0: i32) -> (i32, i32) {
    %c0_i32 = arith.constant 0 : i32
    %c0_i32_0 = arith.constant 0 : i32
    %c0_i32_1 = arith.constant 0 : i32
    return %c0_i32, %c0_i32_0 : i32, i32
  }
  func.func @transform_8(%arg0: i32) -> (i32, i32) {
    %c0_i32 = arith.constant 0 : i32
    %c0_i32_0 = arith.constant 0 : i32
    %c0_i32_1 = arith.constant 0 : i32
    return %c0_i32, %c0_i32_0 : i32, i32
  }
  func.func @transform_9(%arg0: i32) -> (i32, i32) {
    %c0_i32 = arith.constant 0 : i32
    %c0_i32_0 = arith.constant 0 : i32
    %c0_i32_1 = arith.constant 0 : i32
    return %c0_i32, %c0_i32_0 : i32, i32
  }
  func.func @transform_10(%arg0: i32) -> (i32, i32) {
    %c0_i32 = arith.constant 0 : i32
    %c0_i32_0 = arith.constant 0 : i32
    %c0_i32_1 = arith.constant 0 : i32
    return %c0_i32, %c0_i32_0 : i32, i32
  }
  func.func @transform_11(%arg0: i32) -> (i32, i32) {
    %c0_i32 = arith.constant 0 : i32
    %c0_i32_0 = arith.constant 0 : i32
    %c0_i32_1 = arith.constant 0 : i32
    return %c0_i32, %c0_i32_0 : i32, i32
  }
  func.func @transform_12(%arg0: i32) -> (i32, i32) {
    %c0_i32 = arith.constant 0 : i32
    %c0_i32_0 = arith.constant 0 : i32
    %c0_i32_1 = arith.constant 0 : i32
    return %c0_i32, %c0_i32_0 : i32, i32
  }
  func.func @transform_13(%arg0: i32) -> (i32, i32) {
    %c0_i32 = arith.constant 0 : i32
    %c0_i32_0 = arith.constant 0 : i32
    %c0_i32_1 = arith.constant 0 : i32
    return %c0_i32, %c0_i32_0 : i32, i32
  }
  func.func @transform_14(%arg0: i32) -> (i32, i32) {
    %c0_i32 = arith.constant 0 : i32
    %c0_i32_0 = arith.constant 0 : i32
    %c0_i32_1 = arith.constant 0 : i32
    return %c0_i32, %c0_i32_0 : i32, i32
  }
  func.func @transform_15(%arg0: i32) -> (i32, i32) {
    %c0_i32 = arith.constant 0 : i32
    %c0_i32_0 = arith.constant 0 : i32
    %c0_i32_1 = arith.constant 0 : i32
    return %c0_i32, %c0_i32_0 : i32, i32
  }
  func.func @transform_16(%arg0: i32) -> (i32, i32) {
    %c0_i32 = arith.constant 0 : i32
    %c0_i32_0 = arith.constant 0 : i32
    %c0_i32_1 = arith.constant 0 : i32
    return %c0_i32, %c0_i32_0 : i32, i32
  }
  func.func @transform_17(%arg0: i32) -> (i32, i32) {
    %c0_i32 = arith.constant 0 : i32
    %c0_i32_0 = arith.constant 0 : i32
    %c0_i32_1 = arith.constant 0 : i32
    return %c0_i32, %c0_i32_0 : i32, i32
  }
}

</mosaic_0001>

<bundles_post_ra>
// kernel: transformer_encoder_layer.1
= control target key start
LH: loop header
LB: loop body
LE: loop exit
PB: predicated region body
PF: predicated region fallthrough
CT: control target
= control target key end

     0   :  { %s1843_s0 = inlined_call_operand.vmem [shape: f32[16,32], index: 0, kind: input, shape index: {}]   ;;  %s1844_s1 = inlined_call_operand.vmem [shape: f32[16,32], index: 1, kind: input, shape index: {}]   ;;  %s1845_s2 = inlined_call_operand.vmem [shape: bf16[32,64], index: 2, kind: input, shape index: {}]   ;;  %s1846_s3 = inlined_call_operand.vmem [shape: f32[1,64], index: 3, kind: input, shape index: {}]   ;;  %s1847_s4 = inlined_call_operand.vmem [shape: bf16[32,32], index: 4, kind: input, shape index: {}]   ;;  %s1848_s5 = inlined_call_operand.vmem [shape: f32[1,32], index: 5, kind: input, shape index: {}]   ;;  %s1849_s6 = inlined_call_operand.vmem [shape: bf16[32,32], index: 6, kind: input, shape index: {}]   ;;  %s1850_s7 = inlined_call_operand.vmem [shape: f32[1,32], index: 7, kind: input, shape index: {}]   ;;  %s1851_s8 = inlined_call_operand.vmem [shape: f32[1,32], index: 8, kind: input, shape index: {}]   ;;  %s1852_s9 = inlined_call_operand.vmem [shape: f32[1,32], index: 9, kind: input, shape index: {}]   ;;  %s1853_s10 = inlined_call_operand.vmem [shape: f32[1,32], index: 10, kind: input, shape index: {}]   ;;  %s1854_s11 = inlined_call_operand.vmem [shape: f32[1,32], index: 11, kind: input, shape index: {}]   ;;  %s1855_s12 = inlined_call_operand.vmem [shape: bf16[32,64], index: 12, kind: input, shape index: {}]   ;;  %s1856_s13 = inlined_call_operand.vmem [shape: f32[1,64], index: 13, kind: input, shape index: {}]   ;;  %s1857_s14 = inlined_call_operand.vmem [shape: bf16[64,32], index: 14, kind: input, shape index: {}]   ;;  %s1858_s15 = inlined_call_operand.vmem [shape: f32[1,32], index: 15, kind: input, shape index: {}]   ;;  %s1859_s16 = inlined_call_operand.hbm [shape: f32[16,32], index: 16, kind: output, shape index: {0}]   ;;  %s1860_s17 = inlined_call_operand.vmem [shape: f32[2,16], index: 17, kind: output, shape index: {1}]  }
   0x1   :  { %1863 = sst [smem:[#allocation5_spill]] %s1843_s0 }
   0x2   :  { %1864 = sst [smem:[#allocation6_spill]] %s1844_s1 }
   0x3   :  { %v1411_v0 = vld [vmem:[%s1845_s2] sm:$0xff]   ;;  %v1485_v1 = vmov 0.0   ;;  %v1412_v2 = vld [vmem:[%s1845_s2 + $0x8] sm:$0xff]   ;;  %vm1486_vm0 = vmmov 0   ;;  %s1865_s0 = sld [smem:[#allocation5_spill]]  ;;  %s1866_s2 = sld [smem:[#allocation6_spill]] }
   0x4   :  { %1290 = vmatprep.subr.bf16.mxu0 %v1485_v1  ;;  %1298 = vmatprep.subr.bf16.mxu1 %v1485_v1  ;;  %vm88_vm1 = vcmask 261120  }
   0x5   :  { %1291 = vmatpush3.bf16.msra.mxu0 %v1411_v0  ;;  %1294 = vmatprep.mubr.msk.bf16.mxu0 %vm1486_vm0, %v1485_v1 }
   0x6   :  { %1292 = vmatprep.subr.bf16.mxu0 %v1485_v1  ;;  %1302 = vmatprep.mubr.msk.bf16.mxu1 %vm1486_vm0, %v1485_v1 }
   0x9   :  { %v1601_v3 = vld [vmem:[%s1865_s0] sm:$0xff]  ;;  %v1606_v4 = vld [vmem:[%s1865_s0 + $0x8] sm:$0xff]  ;;  %1293 = vmatpush3.bf16.msra.mxu0 %v1412_v2 }
   0xa   :  { %v59_v5 = vld [vmem:[%s1866_s2] sm:$0xff]  ;;  %v60_v6 = vld [vmem:[%s1866_s2 + $0x8] sm:$0xff]  ;;  %1306 = vmatprep.subr.bf16.mxu0 %v1485_v1 }
   0xb   :  { %v61_v7 = vadd.f32 %v59_v5, %v1601_v3  ;;  %v62_v8 = vadd.f32 %v60_v6, %v1606_v4 }
   0xd   :  { %v63_v9 = vpack.c.bf16 %v62_v8, %v61_v7 }
   0xf   :  { %1295 = vmatmul.mubr.msk.bf16.vlgmr.msra.gmra.mrb[0].mxu0 %vm88_vm1, %v63_v9 }
  0x10   :  { %23 = vsyncpa [#allocation3], 0  ;;  %1308 = vmatprep.mubr.msk.bf16.mxu0 %vm1486_vm0, %v1485_v1  ;;  %v1217_v10 = vld [vmem:[%s1846_s3] ss:$0 sm:$0xff]  ;;  %s1487_s24 = smov 120   ;;  %s1488_s25 = smov 96   ;;  %v64_v20 = vpack.c.bf16 %v1606_v4, %v1601_v3  ;;  %v202_v26 = vlaneseq }
  0x11   :  { %v1413_v18 = vld [vmem:[%s1847_s4] sm:$0xff]   ;;  %s1489_s3 = smov 88   ;;  %v1414_v19 = vld [vmem:[%s1847_s4 + $0x8] sm:$0xff]   ;;  %vm250_vm2 = vcmask 64512   ;;  %v1490_v33 = vmov -1e+30  }
  0x12   :  { %1299 = vmatpush3.bf16.msra.mxu1 %v1413_v18  ;;  %v203_v27 = vshrl.u32 %v202_v26, 7  ;;  %v230_v28 = vand.u32 127, %v202_v26  ;;  %vm298_vm5 = vcmask 130048   ;;  %v1221_v52 = vld [vmem:[%s1848_s5] ss:$0 sm:$0xff]  ;;  %s1491_s5 = smov 80  }
  0x13   :  { %1300 = vmatprep.subr.bf16.mxu1 %v1485_v1  ;;  %s1492_s30 = smov 112   ;;  %vm497_vm6 = vcmask 1043456   ;;  %s1493_s20 = smov 104   ;;  %vm936_vm7 = vcmask 123904   ;;  %vm1104_vm8 = vcmask 523264  }
  0x14   :  { %v204_v29 = vadd.s32 8, %v203_v27  ;;  %v209_v30 = vand.u32 1, %v203_v27  ;;  %v235_v31 = vand.u32 1, %v230_v28  ;;  %s1494_s21 = smov 72  }
  0x16   :  { %1301 = vmatpush3.bf16.msra.mxu1 %v1414_v19  ;;  %v216_v32 = vand.u32 1, %v204_v29  ;;  %vm243_vm3 = vcmp.eq.s32.totalorder %v209_v30, %v235_v31 }
  0x17   :  { %1312 = vmatprep.subr.bf16.mxu1 %v1485_v1  ;;  %v1656_v34 = vsel %vm243_vm3, 0.0, %v1490_v33 }
  0x18   :  { %vm244_vm4 = vcmp.eq.s32.totalorder %v216_v32, %v235_v31 }
  0x19   :  { %1303 = vmatmul.mubr.msk.bf16.vlgmr.msra.gmra.mrb[0].mxu1 %vm88_vm1, %v64_v20  ;;  %v1658_v36 = vsel %vm244_vm4, 0.0, %v1490_v33 }
  0x1a   :  { %1314 = vmatprep.mubr.msk.bf16.mxu1 %vm1486_vm0, %v1485_v1 }
  0xe2   :  { %v126_v11 = vpop.f32.mrb[0].mxu0 }
  0xe3   :  { %v1296_v12 = vpop.f32.mrb[1].mxu0  ;;  %v127_v14 = vadd.f32 %v1217_v10, %v126_v11 }
  0xe4   :  { %v129_v13 = vpop.f32.mrb[2].mxu0 }
  0xe5   :  { %v130_v15 = vadd.f32 %v1217_v10, %v129_v13  ;;  %v1297_v16 = vpop.f32.mrb[3].mxu0 }
  0xe7   :  { %v1626_v17 = vpack.c.bf16 %v130_v15, %v127_v14 }
  0xe9   :  { %369 = vrot.lane.b32.xlu1 %v1626_v17, %s1487_s24  ;;  %248 = vrot.lane.b32.xlu0 %v1626_v17, %s1488_s25 }
  0xec   :  { %v193_v53 = vpop.f32.mrb[0].mxu1 }
  0xed   :  { %371 = vrot.lane.b32.xlu0 %v1626_v17, %s1489_s3  ;;  %v194_v54 = vadd.f32 %v1221_v52, %v193_v53  ;;  %v1304_v55 = vpop.f32.mrb[1].mxu1 }
  0xee   :  { %v196_v56 = vpop.f32.mrb[2].mxu1 }
  0xef   :  { %v197_v57 = vadd.f32 %v1221_v52, %v196_v56  ;;  %v1305_v58 = vpop.f32.mrb[3].mxu1 }
  0xf1   :  { %v1671_v59 = vpack.c.bf16 %v197_v57, %v194_v54 }
  0xf3   :  { %1313 = vmatpush3.bf16.msra.mxu1 %v1671_v59 }
  0xf4   :  { %1324 = vmatprep.subr.bf16.mxu1 %v1485_v1 }
 0x15b   :  { %v249_v21 = vpop.permute.xlu0 %248  ;;  %v370_v25 = vpop.permute.xlu1 %369 }
 0x15c   :  { %v255_v22 = vsel %vm250_vm2, %v249_v21, 0 }
 0x15d   :  { %1307 = vmatpush3.bf16.xpose.msra.mxu0 %v255_v22 }
 0x15e   :  { %1318 = vmatprep.subr.bf16.mxu0 %v1485_v1 }
 0x15f   :  { %v372_v23 = vpop.permute.xlu0 %371 }
 0x160   :  { %v377_v24 = vsel %vm250_vm2, %v372_v23, 0 }
 0x164   :  { %1309 = vmatmul.mubr.msk.bf16.vlgmr.msra.gmra.mrb[4].mxu0 %vm250_vm2, %v1626_v17 }
 0x165   :  { %1319 = vmatpush3.bf16.xpose.msra.mxu0 %v377_v24  ;;  %1320 = vmatprep.mubr.msk.bf16.mxu0 %vm1486_vm0, %v1485_v1 }
 0x166   :  { %1330 = vmatprep.subr.bf16.mxu0 %v1485_v1 }
 0x16c   :  { %1321 = vmatmul.mubr.msk.bf16.vlgmr.msra.gmra.mrb[8].mxu0 %vm250_vm2, %v370_v25 }
 0x16d   :  { %1332 = vmatprep.mubr.msk.bf16.mxu0 %vm1486_vm0, %v1485_v1 }
 0x237   :  { %v291_v35 = vpop.f32.mrb[4].mxu0 }
 0x238   :  { %v292_v37 = vadd.f32 %v291_v35, %v1656_v34  ;;  %v1310_v38 = vpop.f32.mrb[5].mxu0 }
 0x239   :  { %v294_v39 = vpop.f32.mrb[6].mxu0  ;;  %v367_v38 = vld [vmem:[%s1849_s6] sm:$0xf] }
 0x23a   :  { %v295_v40 = vadd.f32 %v294_v39, %v1658_v36  ;;  %v1311_v41 = vpop.f32.mrb[7].mxu0  ;;  %v299_v42 = vsel %vm298_vm5, %v292_v37, -inf  ;;  %v546_v39 = vsel %vm497_vm6, %v367_v38, 0 }
 0x23b   :  { %300 = vmax.xlane.f32.xlu1 %v299_v42 }
 0x23c   :  { %v302_v43 = vsel %vm298_vm5, %v295_v40, -inf }
 0x23d   :  { %303 = vmax.xlane.f32.xlu0 %v302_v43 }
 0x23f   :  { %v413_v44 = vpop.f32.mrb[8].mxu0 }
 0x240   :  { %v414_v45 = vadd.f32 %v413_v44, %v1656_v34  ;;  %v1322_v46 = vpop.f32.mrb[9].mxu0 }
 0x241   :  { %v416_v47 = vpop.f32.mrb[10].mxu0 }
 0x242   :  { %v417_v48 = vadd.f32 %v416_v47, %v1658_v36  ;;  %v1323_v49 = vpop.f32.mrb[11].mxu0  ;;  %v420_v50 = vsel %vm298_vm5, %v414_v45, -inf }
 0x243   :  { %421 = vmax.xlane.f32.xlu0 %v420_v50 }
 0x244   :  { %v423_v51 = vsel %vm298_vm5, %v417_v48, -inf }
 0x245   :  { %424 = vmax.xlane.f32.xlu1 %v423_v51 }
 0x2c8   :  { %v301_v60 = vpop.xlane.xlu1 %300 }
 0x2c9   :  { %v305_v61 = vsub.f32 %v292_v37, %v301_v60 }
 0x2ca   :  { %v304_v62 = vpop.xlane.xlu0 %303 }
 0x2cb   :  { %v307_v63 = vmul.f32 1.442695, %v305_v61  ;;  %v306_v0 = vsub.f32 %v295_v40, %v304_v62  ;;  %v492_v40 = vld [vmem:[%s1849_s6 + $0x4] sm:$0xf] }
 0x2cc   :  { %v499_v41 = vsel %vm497_vm6, %v492_v40, 0 }
 0x2cd   :  { %1421 = vpow2.f32 %v307_v63  ;;  %v309_v2 = vmul.f32 1.442695, %v306_v0  ;;  %1331 = vmatpush3.bf16.msra.mxu0 %v499_v41 }
 0x2ce   :  { %1342 = vmatprep.subr.bf16.mxu0 %v1485_v1 }
 0x2cf   :  { %1423 = vpow2.f32 %v309_v2 }
 0x2d0   :  { %v422_v5 = vpop.xlane.xlu0 %421 }
 0x2d1   :  { %v426_v6 = vsub.f32 %v414_v45, %v422_v5 }
 0x2d2   :  { %v425_v7 = vpop.xlane.xlu1 %424 }
 0x2d3   :  { %v428_v8 = vmul.f32 1.442695, %v426_v6  ;;  %v427_v9 = vsub.f32 %v417_v48, %v425_v7 }
 0x2d5   :  { %1425 = vpow2.f32 %v428_v8  ;;  %v430_v10 = vmul.f32 1.442695, %v427_v9 }
 0x2d7   :  { %v1422_v11 = vpop.eup %1421  ;;  %1427 = vpow2.f32 %v430_v10 }
 0x2d8   :  { %v311_v12 = vsel %vm298_vm5, %v1422_v11, 0.0 }
 0x2d9   :  { %v1424_v13 = vpop.eup %1423  ;;  %312 = vadd.xlane.f32.xlu0 %v311_v12 }
 0x2da   :  { %v314_v14 = vsel %vm298_vm5, %v1424_v13, 0.0 }
 0x2db   :  { %315 = vadd.xlane.f32.xlu1 %v314_v14 }
 0x2df   :  { %v1426_v15 = vpop.eup %1425 }
 0x2e0   :  { %v432_v16 = vsel %vm298_vm5, %v1426_v15, 0.0 }
 0x2e1   :  { %v1428_v18 = vpop.eup %1427  ;;  %433 = vadd.xlane.f32.xlu0 %v432_v16 }
 0x2e2   :  { %v435_v19 = vsel %vm298_vm5, %v1428_v18, 0.0 }
 0x2e3   :  { %436 = vadd.xlane.f32.xlu1 %v435_v19 }
 0x2f4   :  { %591 = vrot.lane.b32.xlu1 %v1626_v17, %s1491_s5 }
 0x2f7   :  { %445 = vrot.lane.b32.xlu0 %v1671_v59, %s1487_s24 }
 0x2f8   :  { %589 = vrot.lane.b32.xlu1 %v1626_v17, %s1492_s30 }
 0x366   :  { %v313_v20 = vpop.xlane.xlu0 %312 }
 0x367   :  { %1429 = vrcp.f32 %v313_v20 }
 0x368   :  { %v316_v21 = vpop.xlane.xlu1 %315 }
 0x369   :  { %1431 = vrcp.f32 %v316_v21 }
 0x36e   :  { %v434_v22 = vpop.xlane.xlu0 %433 }
 0x36f   :  { %1433 = vrcp.f32 %v434_v22 }
 0x370   :  { %v437_v23 = vpop.xlane.xlu1 %436 }
 0x371   :  { %v1430_v24 = vpop.eup %1429  ;;  %1435 = vrcp.f32 %v437_v23 }
 0x372   :  { %v319_v26 = vmul.f32 %v1430_v24, %v1422_v11  ;;  %v446_v28 = vpop.permute.xlu0 %445 }
 0x373   :  { %v1432_v25 = vpop.eup %1431 }
 0x374   :  { %v320_v27 = vmul.f32 %v1432_v25, %v1424_v13  ;;  %v592_v49 = vpop.permute.xlu1 %591 }
 0x375   :  { %v597_v53 = vsel %vm250_vm2, %v592_v49, 0 }
 0x376   :  { %v322_v29 = vpack.c.bf16 %v320_v27, %v319_v26 }
 0x378   :  { %1315 = vmatmul.mubr.msk.bf16.vlgmr.msra.gmra.mrb[4].mxu1 %vm298_vm5, %v322_v29  ;;  %v590_v54 = vpop.permute.xlu1 %589 }
 0x379   :  { %v1434_v30 = vpop.eup %1433  ;;  %1325 = vmatpush3.bf16.msra.mxu1 %v446_v28  ;;  %1326 = vmatprep.mubr.msk.bf16.mxu1 %vm1486_vm0, %v1485_v1 }
 0x37a   :  { %v440_v31 = vmul.f32 %v1434_v30, %v1426_v15  ;;  %1336 = vmatprep.subr.bf16.mxu1 %v1485_v1 }
 0x37b   :  { %v1436_v32 = vpop.eup %1435 }
 0x37c   :  { %v1688_v33 = vadd.f32 %v440_v31, %v319_v26  ;;  %v441_v35 = vmul.f32 %v1436_v32, %v1428_v18 }
 0x37e   :  { %v443_v37 = vpack.c.bf16 %v441_v35, %v440_v31 }
 0x380   :  { %1327 = vmatmul.mubr.msk.bf16.vlgmr.msra.gmra.mrb[8].mxu1 %vm298_vm5, %v443_v37 }
 0x381   :  { %1338 = vmatprep.mubr.msk.bf16.mxu1 %vm1486_vm0, %v1485_v1  ;;  %1337 = vmatpush3.bf16.msra.mxu1 %v546_v39 }
 0x382   :  { %1348 = vmatprep.subr.bf16.mxu1 %v1485_v1 }
 0x44b   :  { %v360_v42 = vpop.f32.mrb[4].mxu1 }
 0x44c   :  { %v1316_v43 = vpop.f32.mrb[5].mxu1 }
 0x44d   :  { %v363_v44 = vpop.f32.mrb[6].mxu1 }
 0x44e   :  { %v368_v45 = vpack.c.bf16 %v363_v44, %v360_v42  ;;  %v1317_v46 = vpop.f32.mrb[7].mxu1 }
 0x450   :  { %1339 = vmatmul.mubr.msk.bf16.vlgmr.msra.gmra.mrb[12].mxu1 %vm250_vm2, %v368_v45 }
 0x451   :  { %1350 = vmatprep.mubr.msk.bf16.mxu1 %vm1486_vm0, %v1485_v1 }
 0x453   :  { %v485_v47 = vpop.f32.mrb[8].mxu1 }
 0x454   :  { %v1328_v48 = vpop.f32.mrb[9].mxu1 }
 0x455   :  { %v488_v50 = vpop.f32.mrb[10].mxu1 }
 0x456   :  { %v493_v51 = vpack.c.bf16 %v488_v50, %v485_v47  ;;  %v1329_v52 = vpop.f32.mrb[11].mxu1 }
 0x458   :  { %1333 = vmatmul.mubr.msk.bf16.vlgmr.msra.gmra.mrb[12].mxu0 %vm250_vm2, %v493_v51 }
 0x459   :  { %1343 = vmatpush3.bf16.xpose.msra.mxu0 %v597_v53  ;;  %1344 = vmatprep.mubr.msk.bf16.mxu0 %vm1486_vm0, %v1485_v1 }
 0x45a   :  { %1354 = vmatprep.subr.bf16.mxu0 %v1485_v1 }
 0x460   :  { %1345 = vmatmul.mubr.msk.bf16.vlgmr.msra.gmra.mrb[16].mxu0 %vm250_vm2, %v590_v54 }
 0x461   :  { %1356 = vmatprep.mubr.msk.bf16.mxu0 %vm1486_vm0, %v1485_v1 }
 0x523   :  { %v582_v55 = vpop.f32.mrb[12].mxu1 }
 0x524   :  { %v1340_v56 = vpop.f32.mrb[13].mxu1 }
 0x525   :  { %v585_v57 = vpop.f32.mrb[14].mxu1 }
 0x526   :  { %v1341_v58 = vpop.f32.mrb[15].mxu1 }
 0x52b   :  { %v535_v60 = vpop.f32.mrb[12].mxu0 }
 0x52c   :  { %v1714_v61 = vadd.f32 %v582_v55, %v535_v60  ;;  %v1334_v62 = vpop.f32.mrb[13].mxu0 }
 0x52d   :  { %v538_v63 = vpop.f32.mrb[14].mxu0  ;;  %v884_v62 = vld [vmem:[%s1849_s6 + $0xc] sm:$0xf] }
 0x52e   :  { %v1716_v0 = vadd.f32 %v585_v57, %v538_v63  ;;  %v1335_v2 = vpop.f32.mrb[15].mxu0  ;;  %v890_v63 = vsel %vm497_vm6, %v884_v62, 0 }
 0x533   :  { %v633_v5 = vpop.f32.mrb[16].mxu0 }
 0x534   :  { %v634_v6 = vadd.f32 %v633_v5, %v1656_v34  ;;  %v1346_v7 = vpop.f32.mrb[17].mxu0 }
 0x535   :  { %v636_v8 = vpop.f32.mrb[18].mxu0 }
 0x536   :  { %v637_v9 = vadd.f32 %v636_v8, %v1658_v36  ;;  %v1347_v10 = vpop.f32.mrb[19].mxu0  ;;  %v640_v11 = vsel %vm298_vm5, %v634_v6, -inf }
 0x537   :  { %641 = vmax.xlane.f32.xlu0 %v640_v11 }
 0x538   :  { %v643_v12 = vsel %vm298_vm5, %v637_v9, -inf }
 0x539   :  { %644 = vmax.xlane.f32.xlu1 %v643_v12 }
 0x54a   :  { %664 = vrot.lane.b32.xlu1 %v1671_v59, %s1492_s30 }
 0x54e   :  { %762 = vrot.lane.b32.xlu1 %v1626_v17, %s1493_s20 }
 0x5c4   :  { %v642_v13 = vpop.xlane.xlu0 %641 }
 0x5c5   :  { %v646_v14 = vsub.f32 %v634_v6, %v642_v13 }
 0x5c6   :  { %v645_v15 = vpop.xlane.xlu1 %644 }
 0x5c7   :  { %v648_v16 = vmul.f32 1.442695, %v646_v14  ;;  %v647_v18 = vsub.f32 %v637_v9, %v645_v15 }
 0x5c9   :  { %1437 = vpow2.f32 %v648_v16  ;;  %v650_v19 = vmul.f32 1.442695, %v647_v18 }
 0x5ca   :  { %v665_v20 = vpop.permute.xlu1 %664 }
 0x5cb   :  { %1439 = vpow2.f32 %v650_v19  ;;  %1349 = vmatpush3.bf16.msra.mxu1 %v665_v20 }
 0x5cc   :  { %1360 = vmatprep.subr.bf16.mxu1 %v1485_v1 }
 0x5d3   :  { %v1438_v21 = vpop.eup %1437 }
 0x5d4   :  { %v652_v22 = vsel %vm298_vm5, %v1438_v21, 0.0 }
 0x5d5   :  { %v1440_v23 = vpop.eup %1439  ;;  %653 = vadd.xlane.f32.xlu0 %v652_v22 }
 0x5d6   :  { %v655_v24 = vsel %vm298_vm5, %v1440_v23, 0.0 }
 0x5d9   :  { %656 = vadd.xlane.f32.xlu0 %v655_v24  ;;  %v1237_v24 = vld [vmem:[%s1850_s7] ss:$0 sm:$0xff] }
 0x5ef   :  { %764 = vrot.lane.b32.xlu0 %v1626_v17, %s1494_s21  ;;  %v763_v17 = vpop.permute.xlu1 %762 }
 0x662   :  { %v654_v25 = vpop.xlane.xlu0 %653 }
 0x663   :  { %1441 = vrcp.f32 %v654_v25 }
 0x666   :  { %v657_v26 = vpop.xlane.xlu0 %656 }
 0x667   :  { %1443 = vrcp.f32 %v657_v26 }
 0x66a   :  { %v765_v32 = vpop.permute.xlu0 %764 }
 0x66b   :  { %v770_v37 = vsel %vm250_vm2, %v765_v32, 0 }
 0x66d   :  { %v1442_v27 = vpop.eup %1441 }
 0x66e   :  { %v660_v28 = vmul.f32 %v1442_v27, %v1438_v21 }
 0x670   :  { %v1731_v29 = vadd.f32 %v660_v28, %v1688_v33  ;;  %v711_v33 = vld [vmem:[%s1849_s6 + $0x8] sm:$0xf]  ;;  %s1495_s6 = smov [#allocation2]  }
 0x671   :  { %v1444_v30 = vpop.eup %1443  ;;  %v717_v38 = vsel %vm497_vm6, %v711_v33, 0  ;;  %s1202_s26 = sshll.u32 %s1495_s6, 4  ;;  %s1203_s26 = int_to_ptr.vmem [resolvable:$true] %s1202_s26 }
 0x672   :  { %v661_v31 = vmul.f32 %v1444_v30, %v1440_v23  ;;  %1355 = vmatpush3.bf16.msra.mxu0 %v717_v38  ;;  %s1461_s27 = scalar_lea.vmem %s1203_s26, 256  ;;  %p1466_p1 = scmp.lt.s32.totalorder %s1203_s26, %s1203_s26 }
 0x673   :  { %1366 = vmatprep.subr.bf16.mxu0 %v1485_v1  ;;  %p1462_p0 = scmp.ne.s32.totalorder %s1203_s26, %s1461_s27  ;;  %p1467_p2 = scmp.lt.s32.totalorder %s1461_s27, %s1461_s27 }
 0x674   :  { %v663_v35 = vpack.c.bf16 %v661_v31, %v660_v28 }
 0x675   :  { %p1468_p3 = por %p1467_p2, %p1466_p1 }
 0x676   :  { %1351 = vmatmul.mubr.msk.bf16.vlgmr.msra.gmra.mrb[16].mxu1 %vm298_vm5, %v663_v35 }
 0x677   :  { %1361 = vmatpush3.bf16.xpose.msra.mxu1 %v770_v37  ;;  %1362 = vmatprep.mubr.msk.bf16.mxu1 %vm1486_vm0, %v1485_v1  ;;  %p1469_p4 = pnand %p1468_p3, %p1462_p0 }
 0x678   :  { %1372 = vmatprep.subr.bf16.mxu1 %v1485_v1 }
 0x67e   :  { %1363 = vmatmul.mubr.msk.bf16.vlgmr.msra.gmra.mrb[20].mxu1 %vm250_vm2, %v763_v17 }
 0x67f   :  { %1374 = vmatprep.mubr.msk.bf16.mxu1 %vm1486_vm0, %v1485_v1  ;;  %1373 = vmatpush3.bf16.msra.mxu1 %v890_v63 }
 0x680   :  { %1386 = vmatprep.subr.bf16.mxu1 %v1485_v1 }
 0x749   :  { %v704_v39 = vpop.f32.mrb[16].mxu1 }
 0x74a   :  { %v1352_v40 = vpop.f32.mrb[17].mxu1 }
 0x74b   :  { %v707_v41 = vpop.f32.mrb[18].mxu1 }
 0x74c   :  { %v712_v42 = vpack.c.bf16 %v707_v41, %v704_v39  ;;  %v1353_v43 = vpop.f32.mrb[19].mxu1 }
 0x74e   :  { %1357 = vmatmul.mubr.msk.bf16.vlgmr.msra.gmra.mrb[20].mxu0 %vm250_vm2, %v712_v42 }
 0x74f   :  { %1368 = vmatprep.mubr.msk.bf16.mxu0 %vm1486_vm0, %v1485_v1 }
 0x751   :  { %v806_v44 = vpop.f32.mrb[20].mxu1 }
 0x752   :  { %v807_v45 = vadd.f32 %v806_v44, %v1656_v34  ;;  %v1364_v46 = vpop.f32.mrb[21].mxu1 }
 0x753   :  { %v809_v47 = vpop.f32.mrb[22].mxu1  ;;  %v1416_v46 = vld [vmem:[%s1855_s12 + $0x8] sm:$0xff]  }
 0x754   :  { %v810_v48 = vadd.f32 %v809_v47, %v1658_v36  ;;  %v1365_v49 = vpop.f32.mrb[23].mxu1  ;;  %v813_v50 = vsel %vm298_vm5, %v807_v45, -inf  ;;  %v1417_v47 = vld [vmem:[%s1857_s14] sm:$0xff]  }
 0x755   :  { %814 = vmax.xlane.f32.xlu1 %v813_v50 }
 0x756   :  { %v816_v51 = vsel %vm298_vm5, %v810_v48, -inf }
 0x757   :  { %817 = vmax.xlane.f32.xlu0 %v816_v51 }
 0x7e2   :  { %v815_v52 = vpop.xlane.xlu1 %814 }
 0x7e3   :  { %v819_v53 = vsub.f32 %v807_v45, %v815_v52 }
 0x7e4   :  { %v818_v54 = vpop.xlane.xlu0 %817 }
 0x7e5   :  { %v821_v55 = vmul.f32 1.442695, %v819_v53  ;;  %v820_v56 = vsub.f32 %v810_v48, %v818_v54  ;;  %v1418_v48 = vld [vmem:[%s1857_s14 + $0x8] sm:$0xff]  }
 0x7e7   :  { %1445 = vpow2.f32 %v821_v55  ;;  %v823_v57 = vmul.f32 1.442695, %v820_v56 }
 0x7e9   :  { %1447 = vpow2.f32 %v823_v57  ;;  %v1238_v57 = vld [vmem:[%s1851_s8] ss:$0 sm:$0xff] }
 0x7f1   :  { %v1446_v34 = vpop.eup %1445 }
 0x7f2   :  { %v825_v58 = vsel %vm298_vm5, %v1446_v34, 0.0 }
 0x7f3   :  { %v1448_v60 = vpop.eup %1447  ;;  %826 = vadd.xlane.f32.xlu0 %v825_v58 }
 0x7f4   :  { %v828_v36 = vsel %vm298_vm5, %v1448_v60, 0.0 }
 0x7f5   :  { %829 = vadd.xlane.f32.xlu1 %v828_v36  ;;  %v1239_v36 = vld [vmem:[%s1852_s9] ss:$0 sm:$0xff] }
 0x809   :  { %837 = vrot.lane.b32.xlu0 %v1671_v59, %s1493_s20 }
 0x821   :  { %v753_v2 = vpop.f32.mrb[20].mxu0 }
 0x822   :  { %v760_v5 = vadd.f32 %v753_v2, %v1714_v61  ;;  %v1358_v6 = vpop.f32.mrb[21].mxu0 }
 0x823   :  { %v756_v7 = vpop.f32.mrb[22].mxu0  ;;  %v1419_v6 = vld [vmem:[%s1857_s14 + $0x10] sm:$0xff]  }
 0x824   :  { %v761_v8 = vadd.f32 %v756_v7, %v1716_v0  ;;  %v1359_v9 = vpop.f32.mrb[23].mxu0  ;;  %v1420_v7 = vld [vmem:[%s1857_s14 + $0x18] sm:$0xff]  }
 0x880   :  { %v827_v10 = vpop.xlane.xlu0 %826 }
 0x881   :  { %1449 = vrcp.f32 %v827_v10 }
 0x882   :  { %v830_v59 = vpop.xlane.xlu1 %829 }
 0x883   :  { %1451 = vrcp.f32 %v830_v59 }
 0x884   :  { %v838_v11 = vpop.permute.xlu0 %837 }
 0x885   :  { %1367 = vmatpush3.bf16.msra.mxu0 %v838_v11 }
 0x886   :  { %1378 = vmatprep.subr.bf16.mxu0 %v1485_v1 }
 0x88b   :  { %v1450_v12 = vpop.eup %1449 }
 0x88c   :  { %v833_v13 = vmul.f32 %v1450_v12, %v1446_v34 }
 0x88d   :  { %v1452_v14 = vpop.eup %1451 }
 0x88e   :  { %v835_v15 = vadd.f32 %v833_v13, %v1731_v29  ;;  %v834_v16 = vmul.f32 %v1452_v14, %v1448_v60 }
 0x890   :  { %v935_v61 = vmul.f32 0.25, %v835_v15  ;;  %v836_v18 = vpack.c.bf16 %v834_v16, %v833_v13 }
 0x892   :  { %937 = vst.msk [vmem:[%s1860_s17] sm:$0x3] %vm936_vm7, %v935_v61  ;;  %1369 = vmatmul.mubr.msk.bf16.vlgmr.msra.gmra.mrb[24].mxu0 %vm298_vm5, %v836_v18 }
 0x893   :  { %1382 = vmatprep.mubr.msk.bf16.mxu0 %vm1486_vm0, %v1485_v1 }
 0x965   :  { %v877_v0 = vpop.f32.mrb[24].mxu0 }
 0x966   :  { %v1370_v19 = vpop.f32.mrb[25].mxu0 }
 0x967   :  { %v880_v20 = vpop.f32.mrb[26].mxu0 }
 0x968   :  { %v885_v21 = vpack.c.bf16 %v880_v20, %v877_v0  ;;  %v1371_v22 = vpop.f32.mrb[27].mxu0 }
 0x96a   :  { %1375 = vmatmul.mubr.msk.bf16.vlgmr.msra.gmra.mrb[24].mxu1 %vm250_vm2, %v885_v21 }
 0x96b   :  { %1394 = vmatprep.mubr.msk.bf16.mxu1 %vm1486_vm0, %v1485_v1  ;;  %1387 = vmatpush3.bf16.msra.mxu1 %v1417_v47 }
 0x96c   :  { %1388 = vmatprep.subr.bf16.mxu1 %v1485_v1 }
 0x96f   :  { %1389 = vmatpush3.bf16.msra.mxu1 %v1418_v48 }
 0x970   :  { %1390 = vmatprep.subr.bf16.mxu1 %v1485_v1 }
 0x973   :  { %1391 = vmatpush3.bf16.msra.mxu1 %v1419_v6 }
 0x974   :  { %1392 = vmatprep.subr.bf16.mxu1 %v1485_v1 }
 0x977   :  { %1393 = vmatpush3.bf16.msra.mxu1 %v1420_v7 }
 0xa3d   :  { %v926_v23 = vpop.f32.mrb[24].mxu1 }
 0xa3e   :  { %v933_v25 = vadd.f32 %v926_v23, %v760_v5  ;;  %v1376_v26 = vpop.f32.mrb[25].mxu1 }
 0xa3f   :  { %v929_v27 = vpop.f32.mrb[26].mxu1 }
 0xa40   :  { %v945_v28 = vadd.f32 %v1237_v24, %v933_v25  ;;  %v934_v29 = vadd.f32 %v929_v27, %v761_v8  ;;  %v1377_v30 = vpop.f32.mrb[27].mxu1  ;;  %v1240_v8 = vld [vmem:[%s1856_s13] ss:$0 sm:$0xff] }
 0xa42   :  { %v946_v31 = vadd.f32 %v1237_v24, %v934_v29  ;;  %v947_v32 = vadd.f32 %v945_v28, %v1601_v3 }
 0xa44   :  { %v949_v35 = vsel %vm88_vm1, %v947_v32, 0.0  ;;  %v948_v37 = vadd.f32 %v946_v31, %v1606_v4  ;;  %v1415_v4 = vld [vmem:[%s1855_s12] sm:$0xff]  }
 0xa45   :  { %950 = vadd.xlane.f32.xlu1 %v949_v35  ;;  %1379 = vmatpush3.bf16.msra.mxu0 %v1415_v4 }
 0xa46   :  { %v952_v17 = vsel %vm88_vm1, %v948_v37, 0.0  ;;  %1380 = vmatprep.subr.bf16.mxu0 %v1485_v1  ;;  %v1244_v1 = vld [vmem:[%s1858_s15] ss:$0 sm:$0xff] }
 0xa49   :  { %953 = vadd.xlane.f32.xlu1 %v952_v17  ;;  %1381 = vmatpush3.bf16.msra.mxu0 %v1416_v46 }
 0xad2   :  { %v951_v33 = vpop.xlane.xlu1 %950 }
 0xad3   :  { %v956_v38 = vmul.f32 0.03125, %v951_v33 }
 0xad5   :  { %v958_v39 = vsub.f32 %v947_v32, %v956_v38 }
 0xad6   :  { %v954_v40 = vpop.xlane.xlu1 %953 }
 0xad7   :  { %v957_v41 = vmul.f32 0.03125, %v954_v40  ;;  %v960_v42 = vmul.f32 %v958_v39, %v958_v39 }
 0xad9   :  { %v959_v43 = vsub.f32 %v948_v37, %v957_v41  ;;  %v962_v44 = vsel %vm88_vm1, %v960_v42, 0.0 }
 0xada   :  { %963 = vadd.xlane.f32.xlu1 %v962_v44  ;;  %v1250_v44 = vld [vmem:[%s1853_s10] ss:$0 sm:$0xff] }
 0xadb   :  { %v961_v45 = vmul.f32 %v959_v43, %v959_v43 }
 0xadd   :  { %v965_v3 = vsel %vm88_vm1, %v961_v45, 0.0 }
 0xade   :  { %966 = vadd.xlane.f32.xlu1 %v965_v3  ;;  %v1251_v3 = vld [vmem:[%s1854_s11] ss:$0 sm:$0xff] }
 0xb67   :  { %v964_v49 = vpop.xlane.xlu1 %963 }
 0xb68   :  { %v968_v50 = vmul.f32 0.03125, %v964_v49 }
 0xb6a   :  { %v970_v51 = vadd.f32 1e-05, %v968_v50 }
 0xb6b   :  { %v967_v52 = vpop.xlane.xlu1 %966 }
 0xb6c   :  { %1453 = vrsqrt.f32 %v970_v51  ;;  %v969_v53 = vmul.f32 0.03125, %v967_v52 }
 0xb6e   :  { %v971_v54 = vadd.f32 1e-05, %v969_v53 }
 0xb70   :  { %1455 = vrsqrt.f32 %v971_v54 }
 0xb76   :  { %v1454_v55 = vpop.eup %1453 }
 0xb77   :  { %v974_v56 = vmul.f32 %v1454_v55, %v958_v39 }
 0xb79   :  { %v983_v58 = vmul.f32 %v1238_v57, %v974_v56 }
 0xb7a   :  { %v1456_v34 = vpop.eup %1455 }
 0xb7b   :  { %v975_v60 = vmul.f32 %v1456_v34, %v959_v43  ;;  %v992_v63 = vadd.f32 %v1239_v36, %v983_v58 }
 0xb7d   :  { %v984_v62 = vmul.f32 %v1238_v57, %v975_v60 }
 0xb7f   :  { %v993_v2 = vadd.f32 %v1239_v36, %v984_v62 }
 0xb81   :  { %v994_v5 = vpack.c.bf16 %v993_v2, %v992_v63 }
 0xb83   :  { %1383 = vmatmul.mubr.msk.bf16.vlgmr.msra.gmra.mrb[28].mxu0 %vm88_vm1, %v994_v5 }
 0xc56   :  { %v1055_v9 = vpop.f32.mrb[28].mxu0 }
 0xc57   :  { %v1056_v10 = vadd.f32 %v1240_v8, %v1055_v9  ;;  %v1384_v59 = vpop.f32.mrb[29].mxu0 }
 0xc58   :  { %v1058_v11 = vpop.f32.mrb[30].mxu0 }
 0xc59   :  { %v1059_v12 = vadd.f32 %v1240_v8, %v1058_v11  ;;  %v1385_v13 = vpop.f32.mrb[31].mxu0  ;;  %v1062_v14 = vmax.f32 %v1056_v10, 0.0 }
 0xc5b   :  { %v1063_v15 = vmax.f32 %v1059_v12, 0.0 }
 0xc5d   :  { %v1064_v16 = vpack.c.bf16 %v1063_v15, %v1062_v14 }
 0xc5f   :  { %1395 = vmatmul.mubr.msk.bf16.vlgmr.msra.gmra.mrb[28].mxu1 %vm1104_vm8, %v1064_v16 }
 0xd32   :  { %v1142_v61 = vpop.f32.mrb[28].mxu1 }
 0xd33   :  { %v1143_v18 = vadd.f32 %v1244_v1, %v1142_v61  ;;  %v1396_v0 = vpop.f32.mrb[29].mxu1 }
 0xd34   :  { %v1145_v19 = vpop.f32.mrb[30].mxu1 }
 0xd35   :  { %v1146_v20 = vadd.f32 %v1244_v1, %v1145_v19  ;;  %v1397_v21 = vpop.f32.mrb[31].mxu1  ;;  %v1149_v22 = vadd.f32 %v1143_v18, %v992_v63 }
 0xd37   :  { %v1151_v23 = vsel %vm88_vm1, %v1149_v22, 0.0  ;;  %v1150_v24 = vadd.f32 %v1146_v20, %v993_v2 }
 0xd38   :  { %1152 = vadd.xlane.f32.xlu1 %v1151_v23 }
 0xd39   :  { %v1154_v25 = vsel %vm88_vm1, %v1150_v24, 0.0 }
 0xd3c   :  { %1155 = vadd.xlane.f32.xlu1 %v1154_v25 }
 0xdc5   :  { %v1153_v26 = vpop.xlane.xlu1 %1152 }
 0xdc6   :  { %v1157_v27 = vmul.f32 0.03125, %v1153_v26 }
 0xdc8   :  { %v1159_v28 = vsub.f32 %v1149_v22, %v1157_v27 }
 0xdc9   :  { %v1156_v29 = vpop.xlane.xlu1 %1155 }
 0xdca   :  { %v1158_v30 = vmul.f32 0.03125, %v1156_v29  ;;  %v1161_v31 = vmul.f32 %v1159_v28, %v1159_v28 }
 0xdcc   :  { %v1160_v32 = vsub.f32 %v1150_v24, %v1158_v30  ;;  %v1163_v35 = vsel %vm88_vm1, %v1161_v31, 0.0 }
 0xdcd   :  { %1164 = vadd.xlane.f32.xlu0 %v1163_v35 }
 0xdce   :  { %v1162_v37 = vmul.f32 %v1160_v32, %v1160_v32 }
 0xdd0   :  { %v1166_v17 = vsel %vm88_vm1, %v1162_v37, 0.0 }
 0xdd1   :  { %1167 = vadd.xlane.f32.xlu1 %v1166_v17 }
 0xe5a   :  { %v1165_v33 = vpop.xlane.xlu0 %1164 }
 0xe5b   :  { %v1169_v38 = vmul.f32 0.03125, %v1165_v33 }
 0xe5d   :  { %v1171_v39 = vadd.f32 1e-05, %v1169_v38 }
 0xe5e   :  { %v1168_v40 = vpop.xlane.xlu1 %1167 }
 0xe5f   :  { %1457 = vrsqrt.f32 %v1171_v39  ;;  %v1170_v41 = vmul.f32 0.03125, %v1168_v40 }
 0xe61   :  { %v1172_v42 = vadd.f32 1e-05, %v1170_v41 }
 0xe63   :  { %1459 = vrsqrt.f32 %v1172_v42 }
 0xe69   :  { %v1458_v43 = vpop.eup %1457 }
 0xe6a   :  { %v1175_v45 = vmul.f32 %v1458_v43, %v1159_v28 }
 0xe6c   :  { %v1184_v4 = vmul.f32 %v1250_v44, %v1175_v45 }
 0xe6d   :  { %v1460_v46 = vpop.eup %1459 }
 0xe6e   :  { %v1176_v47 = vmul.f32 %v1460_v46, %v1160_v32  ;;  %v1193_v48 = vadd.f32 %v1251_v3, %v1184_v4 }
 0xe70   :  { %v1185_v49 = vmul.f32 %v1250_v44, %v1176_v47  ;;  %1195 = vst.msk [vmem:[#allocation2] sm:$0xff] %vm88_vm1, %v1193_v48 }
 0xe72   :  { %v1194_v50 = vadd.f32 %v1251_v3, %v1185_v49 }
 0xe74   :  { %1196 = vst.msk [vmem:[#allocation2 + $0x8] sm:$0xff] %vm88_vm1, %v1194_v50 }
 0xe75   :  { %1472 = shalt.err (!%p1469_p4)
}
 0xe76   :  { %s1473_s3 = scalar_lea.hbm %s1859_s16, 256 }
 0xe77   :  { %p1474_p5 = scmp.ne.s32.totalorder %s1859_s16, %s1473_s3  ;;  %p1477_p6 = scmp.lt.u32.totalorder %s1473_s3, %s1859_s16 }
 0xe79   :  { %p1479_p7 = pnand %p1477_p6, %p1474_p5 }
 0xe7b   :  { %1482 = shalt.err (!%p1479_p7)
}
 0xe7c   :  { %s1496_s4 = smov 128   ;;  %s1497_s0 = smov 8  }
 0xe7d   :  { %1208 = dma.vmem_to_hbm [thread:$0]  %s1203_s26, 256, %s1859_s16, [#allocation3], %s1496_s4, %s1496_s4, %s1497_s0  }
 0xe7e   :  { %1483 = dma.done.wait [#allocation3], 256  }
 0xe7f   :  { %1484 = vsyncadd [#allocation3], 4294967040 }
 0xe80   :  { %1216 = vsyncpa [#allocation3], 1 }

</bundles_post_ra>
